<compile_context>
chip_gen: v7x
topology: tpu7x:2x2x1
jax: 0.10.0
libtpu: 0.0.40
codegen_flags: <defaults>
</compile_context>

<pallas_src>
import jax
import jax.numpy as jnp
from jax.experimental import pallas as pl
from jax.experimental.pallas import tpu as pltpu


HID = 16            # hidden width of the critic MLP
MAX_TB = 2048       # max batch-tile width (lanes); multiple of 128
BF16_MIN_D = 256    # cast state/w1 to bf16 for the fc1 matmul at/above this D


def _round_up(x, m):
    return pl.cdiv(x, m) * m


def _chip_config():
    """Return (num TensorCores the 'parallel' axis can use, vmem_limit_bytes)."""
    kind = ""
    try:
        kind = jax.devices()[0].device_kind.lower()
    except Exception:
        pass
    if "v7" in kind:
        # v7x: 2 TCs/chip but only 64 MiB VMEM per TC -> stay well below it.
        return 2, 48 * 1024 * 1024
    # v5e / v6e: 1 TC, 128 MiB physical VMEM -> 64 MiB leaves ample headroom.
    return 1, 64 * 1024 * 1024


def _pick_batch_tile(B, D, bytes_per_elem, n_cores, vmem_limit_bytes, max_tb):
    """VMEM-budget-driven batch-tile width (multiple of 128 lanes)."""
    # Per batch-lane cost: double-buffered state column (2*D*bpe), double-
    # buffered output column (2*4 B) and ~3 [16, tb] f32 intermediates that may
    # spill out of vregs at large tb.  Use half the VMEM limit as tile budget.
    per_lane = 2 * D * bytes_per_elem + 2 * 4 + 3 * HID * 4
    tb = ((vmem_limit_bytes // 2) // per_lane) // 128 * 128
    tb = min(tb, max_tb, _round_up(max(B, 1), 128))
    if n_cores > 1:
        # Keep >= n_cores grid steps so dimension_semantics=("parallel",)
        # actually shards batch tiles across both TensorCores (v7x).
        tb = min(tb, _round_up(pl.cdiv(max(B, 1), n_cores), 128))
    return max(int(tb), 128)


def _a2c_critic_kernel(x_ref, w1_ref, b1_ref, w2_ref, b2_ref, w3_ref, b3_ref,
                       o_ref):
    # x_ref: [D, TB]  (batch on lanes); weights in PyTorch [out, in] layout.
    x = x_ref[...]

    # fc1 + relu : [16, D] @ [D, TB] -> [16, TB]   (MXU, f32 accumulate)
    h1 = jnp.dot(w1_ref[...], x, preferred_element_type=jnp.float32)
    h1 = jnp.maximum(h1 + b1_ref[...], 0.0)          # b1: [16, 1] broadcasts over lanes

    # fc2 + relu : [16, 16] @ [16, TB] -> [16, TB]
    h2 = jnp.dot(w2_ref[...], h1, preferred_element_type=jnp.float32)
    h2 = jnp.maximum(h2 + b2_ref[...], 0.0)

    # fc3 (N=1): VPU multiply + sublane reduce instead of a [*,16]@[16,1] matmul.
    v = jnp.sum(h2 * w3_ref[...], axis=0, keepdims=True) + b3_ref[...]   # [1, TB]

    o_ref[...] = v.astype(o_ref.dtype)


def a2c_critic_forward(state, params, *, feature_major=False,
                       min_pallas_batch=1024, max_tb=MAX_TB):
    """A2CCritic forward.

    state: [B, state_dim] (PyTorch convention), or [state_dim, B] when
           feature_major=True (lets the producer skip the extra transpose pass).
    params: (w1, b1, w2, b2, w3, b3) in PyTorch nn.Linear layout.
    Returns value estimates [B, 1] float32.
    """
    w1, b1, w2, b2, w3, b3 = params
    if feature_major:
        D, B = state.shape
    else:
        B, D = state.shape

    # Tiny batches: the pallas_call is pure launch/prologue overhead; XLA fuses
    # this 3-layer, 16-wide MLP into a couple of ops with no custom-call boundary.
    if B < min_pallas_batch:
        s_bm = state.T if feature_major else state
        return reference_forward(s_bm, params).astype(jnp.float32)

    # Feature-major input [D, B] (batch on lanes).  No padding: Pallas handles
    # the partial last block (masked output stores; lanes never mix).
    x_t = state if feature_major else state.T

    # For large D the state is the only big operand: ship it (and w1) as bf16
    # through the fc1 MXU matmul (f32 accumulate) to halve its HBM/DMA bytes.
    w1k = w1
    if D >= BF16_MIN_D:
        x_t = x_t.astype(jnp.bfloat16)
        w1k = w1.astype(jnp.bfloat16)

    n_cores, vmem_limit = _chip_config()
    tb = _pick_batch_tile(B, D, x_t.dtype.itemsize, n_cores, vmem_limit, max_tb)
    grid = pl.cdiv(B, tb)

    # Biases / fc3 weight as columns that broadcast over batch lanes.
    b1c = b1.reshape(HID, 1)
    b2c = b2.reshape(HID, 1)
    w3c = w3.reshape(HID, 1)            # PyTorch w3 is [1, 16]
    b3c = b3.reshape(1, 1)

    # Constant index_maps keep the tiny weights/biases VMEM-resident across the
    # whole grid (Pallas does not re-fetch an unchanged block).
    resident = lambda shape: pl.BlockSpec(shape, lambda i: (0, 0))

    out = pl.pallas_call(
        _a2c_critic_kernel,
        out_shape=jax.ShapeDtypeStruct((1, B), jnp.float32),
        grid_spec=pltpu.PrefetchScalarGridSpec(
            num_scalar_prefetch=0,
            grid=(grid,),
            in_specs=[
                pl.BlockSpec((D, tb), lambda i: (0, i)),   # state tile (pipelined)
                resident((HID, D)),                        # w1
                resident((HID, 1)),                        # b1
                resident((HID, HID)),                      # w2
                resident((HID, 1)),                        # b2
                resident((HID, 1)),                        # w3 (as column)
                resident((1, 1)),                          # b3
            ],
            out_specs=pl.BlockSpec((1, tb), lambda i: (0, i)),
        ),
        compiler_params=pltpu.CompilerParams(
            dimension_semantics=("parallel",),     # shard batch tiles across TCs (v7x)
            vmem_limit_bytes=vmem_limit,
        ),
    )(x_t, w1k, b1c, w2, b2c, w3c, b3c)

    # Back to the PyTorch convention: [B, 1].
    return out.reshape(B, 1)


def init_params(key, state_dim):
    """nn.Linear-style U(-1/sqrt(fan_in), 1/sqrt(fan_in)), PyTorch layout [out, in]."""
    dims = [(state_dim, HID), (HID, HID), (HID, 1)]
    params = []
    for fan_in, fan_out in dims:
        key, kw, kb = jax.random.split(key, 3)
        bound = 1.0 / jnp.sqrt(jnp.float32(fan_in))
        w = jax.random.uniform(kw, (fan_out, fan_in), jnp.float32, -bound, bound)
        b = jax.random.uniform(kb, (fan_out,), jnp.float32, -bound, bound)
        params += [w, b]
    return tuple(params)


def reference_forward(state, params):
    w1, b1, w2, b2, w3, b3 = params
    h = jnp.maximum(state @ w1.T + b1, 0.0)
    h = jnp.maximum(h @ w2.T + b2, 0.0)
    return h @ w3.T + b3


if __name__ == "__main__":
    key = jax.random.PRNGKey(0)
    state_dim = 4                                   # CartPole-like

    key, kp = jax.random.split(key)
    params = init_params(kp, state_dim)

    key, kx = jax.random.split(key)
    state_small = jax.random.normal(kx, (8, state_dim), jnp.float32)
    ref_small = reference_forward(state_small, params)

    # 1) Default path at B=8 -> plain-XLA fallback (a pallas_call would be pure
    #    launch overhead at this size).
    v_small = jax.block_until_ready(a2c_critic_forward(state_small, params))
    assert v_small.shape == (8, 1)
    assert jnp.allclose(v_small, ref_small, atol=1e-5, rtol=1e-5)

    # 2) Force the Pallas kernel on the same tiny batch (exercises the masked
    #    partial block: 8 valid lanes inside a 128-lane tile).
    v_pallas = jax.block_until_ready(
        a2c_critic_forward(state_small, params, min_pallas_batch=0))
    assert v_pallas.shape == (8, 1)
    assert jnp.allclose(v_pallas, ref_small, atol=1e-5, rtol=1e-5)

    # 3) Pallas kernel on a non-multiple-of-128 batch (partial last tile path).
    key, kx = jax.random.split(key)
    state_med = jax.random.normal(kx, (300, state_dim), jnp.float32)
    v_med = jax.block_until_ready(
        a2c_critic_forward(state_med, params, min_pallas_batch=0))
    ref_med = reference_forward(state_med, params)
    assert v_med.shape == (300, 1)
    assert jnp.allclose(v_med, ref_med, atol=1e-5, rtol=1e-5)

    print("KERNEL_OK")
</pallas_src>

<mosaic_0001>
module attributes {stable_mosaic.version = 11 : i64} {
  func.func @_a2c_critic_kernel(%arg0: i32, %arg1: memref<4x128xf32, #tpu.memory_space<vmem>>, %arg2: memref<16x4xf32, #tpu.memory_space<vmem>>, %arg3: memref<16x1xf32, #tpu.memory_space<vmem>>, %arg4: memref<16x16xf32, #tpu.memory_space<vmem>>, %arg5: memref<16x1xf32, #tpu.memory_space<vmem>>, %arg6: memref<16x1xf32, #tpu.memory_space<vmem>>, %arg7: memref<1x1xf32, #tpu.memory_space<vmem>>, %arg8: memref<1x128xf32, #tpu.memory_space<vmem>>) attributes {dimension_semantics = [#tpu.dimension_semantics<parallel>], iteration_bounds = array<i64: 1>, scalar_prefetch = 0 : i64, scratch_operands = 0 : i64, tpu.core_type = #tpu.core_type<tc>, window_params = [{transform_indices = @transform_0, window_bounds = array<i64: 4, 128>}, {pipeline_mode = #tpu.pipeline_mode<synchronous>, transform_indices = @transform_1, window_bounds = array<i64: 16, 4>}, {pipeline_mode = #tpu.pipeline_mode<synchronous>, transform_indices = @transform_2, window_bounds = array<i64: 16, 1>}, {pipeline_mode = #tpu.pipeline_mode<synchronous>, transform_indices = @transform_3, window_bounds = array<i64: 16, 16>}, {pipeline_mode = #tpu.pipeline_mode<synchronous>, transform_indices = @transform_4, window_bounds = array<i64: 16, 1>}, {pipeline_mode = #tpu.pipeline_mode<synchronous>, transform_indices = @transform_5, window_bounds = array<i64: 16, 1>}, {pipeline_mode = #tpu.pipeline_mode<synchronous>, transform_indices = @transform_6, window_bounds = array<i64: 1, 1>}, {transform_indices = @transform_7, window_bounds = array<i64: 1, 128>}]} {
    %c0 = arith.constant 0 : index
    %c0_0 = arith.constant 0 : index
    %0 = vector.load %arg1[%c0, %c0_0] : memref<4x128xf32, #tpu.memory_space<vmem>>, vector<4x128xf32>
    %c0_1 = arith.constant 0 : index
    %c0_2 = arith.constant 0 : index
    %1 = vector.load %arg2[%c0_1, %c0_2] : memref<16x4xf32, #tpu.memory_space<vmem>>, vector<16x4xf32>
    %cst = arith.constant dense<0.000000e+00> : vector<16x128xf32>
    %2 = tpu.matmul %1, %0, %cst {dimension_numbers = #tpu.dot_dimension_numbers<[1], [0], [0], [1], [0, 0, 1, 1], [], []>} : vector<16x4xf32>, vector<4x128xf32>, vector<16x128xf32> -> vector<16x128xf32>
    %c0_3 = arith.constant 0 : index
    %c0_4 = arith.constant 0 : index
    %3 = vector.load %arg3[%c0_3, %c0_4] : memref<16x1xf32, #tpu.memory_space<vmem>>, vector<16x1xf32>
    %4 = vector.broadcast %3 : vector<16x1xf32> to vector<16x128xf32>
    %5 = arith.addf %2, %4 : vector<16x128xf32>
    %cst_5 = arith.constant 0.000000e+00 : f32
    %6 = vector.broadcast %cst_5 : f32 to vector<16x128xf32>
    %7 = arith.maximumf %5, %6 : vector<16x128xf32>
    %c0_6 = arith.constant 0 : index
    %c0_7 = arith.constant 0 : index
    %8 = vector.load %arg4[%c0_6, %c0_7] : memref<16x16xf32, #tpu.memory_space<vmem>>, vector<16x16xf32>
    %cst_8 = arith.constant dense<0.000000e+00> : vector<16x128xf32>
    %9 = tpu.matmul %8, %7, %cst_8 {dimension_numbers = #tpu.dot_dimension_numbers<[1], [0], [0], [1], [0, 0, 1, 1], [], []>} : vector<16x16xf32>, vector<16x128xf32>, vector<16x128xf32> -> vector<16x128xf32>
    %c0_9 = arith.constant 0 : index
    %c0_10 = arith.constant 0 : index
    %10 = vector.load %arg5[%c0_9, %c0_10] : memref<16x1xf32, #tpu.memory_space<vmem>>, vector<16x1xf32>
    %11 = vector.broadcast %10 : vector<16x1xf32> to vector<16x128xf32>
    %12 = arith.addf %9, %11 : vector<16x128xf32>
    %cst_11 = arith.constant 0.000000e+00 : f32
    %13 = vector.broadcast %cst_11 : f32 to vector<16x128xf32>
    %14 = arith.maximumf %12, %13 : vector<16x128xf32>
    %c0_12 = arith.constant 0 : index
    %c0_13 = arith.constant 0 : index
    %15 = vector.load %arg6[%c0_12, %c0_13] : memref<16x1xf32, #tpu.memory_space<vmem>>, vector<16x1xf32>
    %16 = vector.broadcast %15 : vector<16x1xf32> to vector<16x128xf32>
    %17 = arith.mulf %14, %16 : vector<16x128xf32>
    %cst_14 = arith.constant dense<0.000000e+00> : vector<128xf32>
    %18 = vector.multi_reduction <add>, %17, %cst_14 [0] : vector<16x128xf32> to vector<128xf32>
    %19 = vector.shape_cast %18 : vector<128xf32> to vector<1x128xf32>
    %c0_15 = arith.constant 0 : index
    %c0_16 = arith.constant 0 : index
    %20 = vector.load %arg7[%c0_15, %c0_16] : memref<1x1xf32, #tpu.memory_space<vmem>>, vector<1x1xf32>
    %21 = vector.broadcast %20 : vector<1x1xf32> to vector<1x128xf32>
    %22 = arith.addf %19, %21 : vector<1x128xf32>
    %c0_17 = arith.constant 0 : index
    %c0_18 = arith.constant 0 : index
    %23 = vector.load %arg8[%c0_17, %c0_18] : memref<1x128xf32, #tpu.memory_space<vmem>>, vector<1x128xf32>
    tpu.vector_store %arg8[%c0_17, %c0_18], %22 {strides = array<i32>} : memref<1x128xf32, #tpu.memory_space<vmem>>, vector<1x128xf32>,
    return
  }
  func.func @transform_0(%arg0: i32) -> (i32, i32) {
    %c0_i32 = arith.constant 0 : i32
    %c0_i32_0 = arith.constant 0 : i32
    return %c0_i32, %arg0 : i32, i32
  }
  func.func @transform_1(%arg0: i32) -> (i32, i32) {
    %c0_i32 = arith.constant 0 : i32
    %c0_i32_0 = arith.constant 0 : i32
    %c0_i32_1 = arith.constant 0 : i32
    return %c0_i32, %c0_i32_0 : i32, i32
  }
  func.func @transform_2(%arg0: i32) -> (i32, i32) {
    %c0_i32 = arith.constant 0 : i32
    %c0_i32_0 = arith.constant 0 : i32
    %c0_i32_1 = arith.constant 0 : i32
    return %c0_i32, %c0_i32_0 : i32, i32
  }
  func.func @transform_3(%arg0: i32) -> (i32, i32) {
    %c0_i32 = arith.constant 0 : i32
    %c0_i32_0 = arith.constant 0 : i32
    %c0_i32_1 = arith.constant 0 : i32
    return %c0_i32, %c0_i32_0 : i32, i32
  }
  func.func @transform_4(%arg0: i32) -> (i32, i32) {
    %c0_i32 = arith.constant 0 : i32
    %c0_i32_0 = arith.constant 0 : i32
    %c0_i32_1 = arith.constant 0 : i32
    return %c0_i32, %c0_i32_0 : i32, i32
  }
  func.func @transform_5(%arg0: i32) -> (i32, i32) {
    %c0_i32 = arith.constant 0 : i32
    %c0_i32_0 = arith.constant 0 : i32
    %c0_i32_1 = arith.constant 0 : i32
    return %c0_i32, %c0_i32_0 : i32, i32
  }
  func.func @transform_6(%arg0: i32) -> (i32, i32) {
    %c0_i32 = arith.constant 0 : i32
    %c0_i32_0 = arith.constant 0 : i32
    %c0_i32_1 = arith.constant 0 : i32
    return %c0_i32, %c0_i32_0 : i32, i32
  }
  func.func @transform_7(%arg0: i32) -> (i32, i32) {
    %c0_i32 = arith.constant 0 : i32
    %c0_i32_0 = arith.constant 0 : i32
    return %c0_i32, %arg0 : i32, i32
  }
}

</mosaic_0001>

<bundles_post_ra>
// kernel: tpu_custom_call.1
= control target key start
LH: loop header
LB: loop body
LE: loop exit
PB: predicated region body
PF: predicated region fallthrough
CT: control target
= control target key end

     0   :  { %s719_s0 = inlined_call_operand.hbm [shape: f32[4,8], index: 0, kind: input, shape index: {}]   ;;  %s720_s1 = inlined_call_operand.hbm [shape: f32[16,4], index: 1, kind: input, shape index: {}]   ;;  %s721_s2 = inlined_call_operand.hbm [shape: f32[16,1], index: 2, kind: input, shape index: {}]   ;;  %s722_s3 = inlined_call_operand.hbm [shape: f32[16,16], index: 3, kind: input, shape index: {}]   ;;  %s723_s4 = inlined_call_operand.hbm [shape: f32[16,1], index: 4, kind: input, shape index: {}]   ;;  %s724_s5 = inlined_call_operand.hbm [shape: f32[16,1], index: 5, kind: input, shape index: {}]   ;;  %s725_s6 = inlined_call_operand.<no memory space> [shape: f32[1,1], index: 6, kind: input, shape index: {}]   ;;  %s726_s7 = inlined_call_operand.hbm [shape: f32[1,8], index: 7, kind: output, shape index: {}]  }
   0x1   :  { %v12_v0 = vstv %s725_s6 }
   0x2   :  { %13 = vst [vmem:[#allocation2] sm:$0x1] %v12_v0 }
   0x3   :  { %14 = vsyncpa [#allocation4], 0 }
   0x4   :  { %15 = vsyncpa [#allocation7], 0 }
   0x5   :  { %16 = vsyncpa [#allocation10], 0 }
   0x6   :  { %17 = vsyncpa [#allocation13], 0 }
   0x7   :  { %18 = vsyncpa [#allocation5], 0  ;;  %s565_s26 = smov [#allocation6]   ;;  %s401_s30 = scalar_lea.hbm %s720_s1, 256 }
   0x8   :  { %s34_s27 = sshll.u32 %s565_s26, 4  ;;  %p402_p0 = scmp.ne.s32.totalorder %s720_s1, %s401_s30  ;;  %s35_s27 = int_to_ptr.vmem [resolvable:$true] %s34_s27 }
   0x9   :  { %p405_p1 = scmp.lt.u32.totalorder %s401_s30, %s720_s1 }
   0xb   :  { %p407_p2 = pnand %p405_p1, %p402_p0 }
   0xd   :  { %410 = shalt.err (!%p407_p2)
}
   0xe   :  { %s411_s6 = scalar_lea.vmem %s35_s27, 256  ;;  %p416_p4 = scmp.lt.s32.totalorder %s35_s27, %s35_s27 }
   0xf   :  { %p412_p3 = scmp.ne.s32.totalorder %s35_s27, %s411_s6  ;;  %p417_p5 = scmp.lt.s32.totalorder %s411_s6, %s411_s6 }
  0x11   :  { %p418_p6 = por %p417_p5, %p416_p4 }
  0x13   :  { %p419_p7 = pnand %p418_p6, %p412_p3 }
  0x15   :  { %422 = shalt.err (!%p419_p7)
}
  0x16   :  { %s566_s12 = smov 128   ;;  %s567_s13 = smov 8  }
  0x17   :  { %40 = dma.hbm_to_vmem [thread:$0]  %s720_s1, 256, %s35_s27, [#allocation7], %s566_s12, %s566_s12, %s567_s13  }
  0x18   :  { %s568_s16 = smov [#allocation9]   ;;  %s569_s18 = smov [#allocation3]  }
  0x19   :  { %s58_s17 = sshll.u32 %s568_s16, 4  ;;  %s25_s19 = sshll.u32 %s569_s18, 4  ;;  %s59_s17 = int_to_ptr.vmem [resolvable:$true] %s58_s17  ;;  %s26_s19 = int_to_ptr.vmem [resolvable:$true] %s25_s19 }
  0x1a   :  { %s423_s22 = scalar_lea.hbm %s722_s3, 256 }
  0x1b   :  { %p424_p8 = scmp.ne.s32.totalorder %s722_s3, %s423_s22  ;;  %p427_p9 = scmp.lt.u32.totalorder %s423_s22, %s722_s3 }
  0x1d   :  { %p429_p10 = pnand %p427_p9, %p424_p8 }
  0x1f   :  { %432 = shalt.err (!%p429_p10)
}
  0x20   :  { %s433_s1 = scalar_lea.vmem %s59_s17, 256  ;;  %p438_p12 = scmp.lt.s32.totalorder %s59_s17, %s59_s17 }
  0x21   :  { %p434_p11 = scmp.ne.s32.totalorder %s59_s17, %s433_s1  ;;  %p439_p13 = scmp.lt.s32.totalorder %s433_s1, %s433_s1 }
  0x23   :  { %p440_p0 = por %p439_p13, %p438_p12 }
  0x25   :  { %p441_p1 = pnand %p440_p0, %p434_p11 }
  0x27   :  { %444 = shalt.err (!%p441_p1)
}
  0x28   :  { %64 = dma.hbm_to_vmem [thread:$0]  %s722_s3, 256, %s59_s17, [#allocation10], %s566_s12, %s566_s12, %s567_s13  }
  0x29   :  { %s445_s8 = scalar_lea.hbm %s719_s0, 64 }
  0x2a   :  { %p446_p2 = scmp.ne.s32.totalorder %s719_s0, %s445_s8  ;;  %p449_p3 = scmp.lt.u32.totalorder %s445_s8, %s719_s0 }
  0x2c   :  { %p451_p4 = pnand %p449_p3, %p446_p2 }
  0x2e   :  { %454 = shalt.err (!%p451_p4)
}
  0x2f   :  { %s455_s14 = scalar_lea.vmem %s26_s19, 64  ;;  %p460_p6 = scmp.lt.s32.totalorder %s26_s19, %s26_s19 }
  0x30   :  { %p456_p5 = scmp.ne.s32.totalorder %s26_s19, %s455_s14  ;;  %p461_p7 = scmp.lt.s32.totalorder %s455_s14, %s455_s14 }
  0x32   :  { %p462_p8 = por %p461_p7, %p460_p6 }
  0x34   :  { %p463_p9 = pnand %p462_p8, %p456_p5 }
  0x36   :  { %466 = shalt.err (!%p463_p9)
}
  0x37   :  { %28 = dma.hbm_to_vmem [thread:$0]  %s719_s0, 64, %s26_s19, [#allocation4]  }
  0x38   :  { %s570_s16 = smov [#allocation8]   ;;  %s571_s18 = smov [#allocation11]  }
  0x39   :  { %s46_s17 = sshll.u32 %s570_s16, 4  ;;  %s70_s20 = sshll.u32 %s571_s18, 4  ;;  %s47_s17 = int_to_ptr.vmem [resolvable:$true] %s46_s17  ;;  %s71_s20 = int_to_ptr.vmem [resolvable:$true] %s70_s20 }
  0x3a   :  { %s467_s23 = scalar_lea.hbm %s721_s2, 256 }
  0x3b   :  { %p468_p10 = scmp.ne.s32.totalorder %s721_s2, %s467_s23  ;;  %p471_p11 = scmp.lt.u32.totalorder %s467_s23, %s721_s2 }
  0x3d   :  { %p473_p12 = pnand %p471_p11, %p468_p10 }
  0x3f   :  { %476 = shalt.err (!%p473_p12)
}
  0x40   :  { %s477_s0 = scalar_lea.vmem %s47_s17, 256  ;;  %p482_p0 = scmp.lt.s32.totalorder %s47_s17, %s47_s17 }
  0x41   :  { %p478_p13 = scmp.ne.s32.totalorder %s47_s17, %s477_s0  ;;  %p483_p1 = scmp.lt.s32.totalorder %s477_s0, %s477_s0 }
  0x43   :  { %p484_p2 = por %p483_p1, %p482_p0 }
  0x45   :  { %p485_p3 = pnand %p484_p2, %p478_p13 }
  0x47   :  { %488 = shalt.err (!%p485_p3)
}
  0x48   :  { %52 = dma.hbm_to_vmem [thread:$0]  %s721_s2, 256, %s47_s17, [#allocation7], %s566_s12, %s566_s12, %s567_s13  }
  0x49   :  { %s489_s30 = scalar_lea.hbm %s723_s4, 256 }
  0x4a   :  { %p490_p4 = scmp.ne.s32.totalorder %s723_s4, %s489_s30  ;;  %p493_p5 = scmp.lt.u32.totalorder %s489_s30, %s723_s4 }
  0x4c   :  { %p495_p6 = pnand %p493_p5, %p490_p4 }
  0x4e   :  { %498 = shalt.err (!%p495_p6)
}
  0x4f   :  { %s499_s6 = scalar_lea.vmem %s71_s20, 256  ;;  %p504_p8 = scmp.lt.s32.totalorder %s71_s20, %s71_s20 }
  0x50   :  { %p500_p7 = scmp.ne.s32.totalorder %s71_s20, %s499_s6  ;;  %p505_p9 = scmp.lt.s32.totalorder %s499_s6, %s499_s6 }
  0x52   :  { %p506_p10 = por %p505_p9, %p504_p8 }
  0x54   :  { %p507_p11 = pnand %p506_p10, %p500_p7 }
  0x56   :  { %510 = shalt.err (!%p507_p11)
}
  0x57   :  { %76 = dma.hbm_to_vmem [thread:$0]  %s723_s4, 256, %s71_s20, [#allocation10], %s566_s12, %s566_s12, %s567_s13  }
  0x58   :  { %s572_s3 = smov [#allocation12]   ;;  %s511_s18 = scalar_lea.hbm %s724_s5, 256 }
  0x59   :  { %s82_s15 = sshll.u32 %s572_s3, 4  ;;  %p512_p12 = scmp.ne.s32.totalorder %s724_s5, %s511_s18  ;;  %s83_s15 = int_to_ptr.vmem [resolvable:$true] %s82_s15 }
  0x5a   :  { %p515_p13 = scmp.lt.u32.totalorder %s511_s18, %s724_s5 }
  0x5c   :  { %p517_p0 = pnand %p515_p13, %p512_p12 }
  0x5e   :  { %520 = shalt.err (!%p517_p0)
}
  0x5f   :  { %s521_s25 = scalar_lea.vmem %s83_s15, 256  ;;  %p526_p2 = scmp.lt.s32.totalorder %s83_s15, %s83_s15 }
  0x60   :  { %p522_p1 = scmp.ne.s32.totalorder %s83_s15, %s521_s25  ;;  %p527_p3 = scmp.lt.s32.totalorder %s521_s25, %s521_s25 }
  0x62   :  { %p528_p4 = por %p527_p3, %p526_p2 }
  0x64   :  { %p529_p5 = pnand %p528_p4, %p522_p1 }
  0x66   :  { %532 = shalt.err (!%p529_p5)
}
  0x67   :  { %88 = dma.hbm_to_vmem [thread:$0]  %s724_s5, 256, %s83_s15, [#allocation13], %s566_s12, %s566_s12, %s567_s13  }
  0x68   :  { %555 = dma.done.wait [#allocation4], 64  }
  0x69   :  { %556 = vsyncadd [#allocation4], 4294967232 }
  0x6a   :  { %557 = dma.done.wait [#allocation7], 512  }
  0x6b   :  { %558 = vsyncadd [#allocation7], 4294966784 }
  0x6c   :  { %559 = dma.done.wait [#allocation10], 512  }
  0x6d   :  { %560 = vsyncadd [#allocation10], 4294966784 }
  0x6e   :  { %561 = dma.done.wait [#allocation13], 256  }
  0x6f   :  { %562 = vsyncadd [#allocation13], 4294967040  ;;  %v573_v1 = vmov 0   ;;  %vm131_vm0 = vcmask 1043456   ;;  %vm124_vm1 = vcmask 31744   ;;  %v110_v3 = vld [vmem:[#allocation6] sm:$0xff]  ;;  %v337_v35 = vlaneseq }
  0x70   :  { %399 = vset.pattern.permute.xlu0 %v573_v1  ;;  %400 = vset.pattern.permute.xlu1 %v573_v1  ;;  %v109_v2 = vld [vmem:[#allocation3] sm:$0xf]  ;;  %v111_v4 = vld [vmem:[#allocation6 + $0x8] sm:$0xff]  ;;  %v112_v5 = vld [vmem:[#allocation8] sm:$0xff]  ;;  %vm226_vm2 = vcmask 130048   ;;  %s574_s5 = smov [#allocation14]  }
  0x71   :  { %373 = vmatprep.subr.msk.mxu0 %vm131_vm0, %v109_v2  ;;  %375 = vmatprep.mubr.msk.f32.mxu0 %vm124_vm1, %v110_v3  ;;  %v113_v6 = vld [vmem:[#allocation8 + $0x8] sm:$0xff]  ;;  %v310_v7 = vld [vmem:[#allocation12] sm:$0xff]  ;;  %v214_v10 = vld [vmem:[#allocation11] sm:$0xff]  ;;  %v338_v38 = vshrl.u32 %v337_v35, 7  ;;  %s349_s12 = sshll.u32 %s574_s5, 4  ;;  %s350_s12 = int_to_ptr.vmem [resolvable:$true] %s349_s12 }
  0x72   :  { %374 = vmatpush3.msk.msra.mxu0 %vm131_vm0, %v109_v2  ;;  %116 = vperm.xlu0 %399, %v112_v5   ;;  %v331_v8 = vld [vmem:[#allocation2] sm:$0x1]  ;;  %v212_v9 = vld [vmem:[#allocation9] sm:$0xff]  ;;  %v311_v12 = vld [vmem:[#allocation12 + $0x8] sm:$0xff]  ;;  %s533_s13 = scalar_lea.vmem %s350_s12, 16  ;;  %s537_s26 = scalar_lea.vmem %s350_s12, 32 }
  0x73   :  { %376 = vmatmul.mubr.msk.f32.vlgmr.msra.gmra.mrb[0].mxu0 %vm124_vm1, %v111_v4  ;;  %382 = vmatprep.mubr.msk.f32.mxu1 %vm226_vm2, %v212_v9  ;;  %v215_v11 = vld [vmem:[#allocation11 + $0x8] sm:$0xff]  ;;  %v213_v22 = vld [vmem:[#allocation9 + $0x8] sm:$0xff]  ;;  %v339_v41 = vsub.s32 0, %v338_v38  ;;  %p534_p6 = scmp.ne.s32.totalorder %s350_s12, %s533_s13  ;;  %p538_p7 = scmp.lt.s32.totalorder %s350_s12, %s350_s12 }
  0x74   :  { %218 = vperm.xlu1 %400, %v214_v10   ;;  %p539_p8 = scmp.lt.s32.totalorder %s537_s26, %s533_s13 }
  0x76   :  { %121 = vperm.xlu0 %399, %v113_v6   ;;  %p540_p9 = por %p539_p8, %p538_p7 }
  0x78   :  { %223 = vperm.xlu1 %400, %v215_v11   ;;  %p541_p10 = pnand %p540_p9, %p534_p6 }
  0x7a   :  { %314 = vperm.xlu0 %399, %v310_v7  }
  0x7c   :  { %319 = vperm.xlu1 %400, %v311_v12  }
  0x7e   :  { %334 = vperm.xlu0 %399, %v331_v8  }
  0xf1   :  { %v117_v13 = vpop.permute.xlu0 %116 }
  0xf3   :  { %v219_v23 = vpop.permute.xlu1 %218 }
  0xf5   :  { %v122_v14 = vpop.permute.xlu0 %121 }
  0xf7   :  { %v224_v24 = vpop.permute.xlu1 %223 }
  0xf9   :  { %v315_v32 = vpop.permute.xlu0 %314 }
  0xfb   :  { %v320_v30 = vpop.permute.xlu1 %319 }
  0xfd   :  { %v335_v43 = vpop.permute.xlu0 %334 }
  0xfe   :  { %v340_v45 = vrot.slane %v335_v43, %v339_v41 }
 0x146   :  { %v377_v15 = vpop.f32.mrb[0].mxu0 }
 0x147   :  { %v207_v16 = vadd.f32 %v377_v15, %v122_v14  ;;  %v201_v17 = vpop.f32.mrb[1].mxu0 }
 0x148   :  { %v202_v18 = vadd.f32 %v201_v17, %v117_v13 }
 0x149   :  { %v211_v19 = vmax.f32 %v207_v16, 0.0 }
 0x14a   :  { %v210_v20 = vmax.f32 %v202_v18, 0.0 }
 0x14c   :  { %v385_v21 = vpack.c.bf16 %v211_v19, %v210_v20 }
 0x14e   :  { %386 = vmatprep.subr.bf16.mxu1 %v385_v21 }
 0x14f   :  { %388 = vmatpush3.bf16.msra.mxu1 %v385_v21 }
 0x152   :  { %383 = vmatmul.mubr.msk.f32.vlgmr.msra.gmra.mrb[0].mxu1 %vm226_vm2, %v213_v22 }
 0x225   :  { %v384_v25 = vpop.f32.mrb[0].mxu1 }
 0x226   :  { %v305_v26 = vadd.f32 %v384_v25, %v224_v24  ;;  %v299_v27 = vpop.f32.mrb[1].mxu1 }
 0x227   :  { %v300_v28 = vadd.f32 %v299_v27, %v219_v23 }
 0x228   :  { %v309_v29 = vmax.f32 %v305_v26, 0.0 }
 0x229   :  { %v308_v31 = vmax.f32 %v300_v28, 0.0 }
 0x22a   :  { %v323_v33 = vmul.f32 %v320_v30, %v309_v29 }
 0x22b   :  { %v322_v34 = vmul.f32 %v315_v32, %v308_v31 }
 0x22d   :  { %v324_v36 = vadd.f32 %v323_v33, %v322_v34 }
 0x22f   :  { %v325_v37 = vrot.slane %v324_v36, 4 }
 0x231   :  { %v326_v39 = vadd.f32 %v325_v37, %v324_v36 }
 0x233   :  { %v327_v40 = vrot.slane %v326_v39, 2 }
 0x235   :  { %v328_v42 = vadd.f32 %v327_v40, %v326_v39 }
 0x237   :  { %v329_v44 = vrot.slane %v328_v42, 1 }
 0x239   :  { %v330_v46 = vadd.f32 %v329_v44, %v328_v42 }
 0x23b   :  { %v341_v47 = vadd.f32 %v340_v45, %v330_v46 }
 0x23d   :  { %342 = vst [vmem:[#allocation14] sm:$0x1] %v341_v47 }
 0x23e   :  { %544 = shalt.err (!%p541_p10)
}
 0x23f   :  { %s545_s19 = scalar_lea.hbm %s726_s7, 16 }
 0x240   :  { %p546_p11 = scmp.ne.s32.totalorder %s726_s7, %s545_s19  ;;  %p549_p12 = scmp.lt.u32.totalorder %s545_s19, %s726_s7 }
 0x242   :  { %p551_p13 = pnand %p549_p12, %p546_p11 }
 0x244   :  { %554 = shalt.err (!%p551_p13)
}
 0x245   :  { %352 = dma.vmem_to_hbm [thread:$0]  %s350_s12, 16, %s726_s7, [#allocation5]  }
 0x246   :  { %563 = dma.done.wait [#allocation5], 16  }
 0x247   :  { %564 = vsyncadd [#allocation5], 4294967280 }
 0x248   :  { %356 = vsyncpa [#allocation4], 1 }
 0x249   :  { %357 = vsyncpa [#allocation7], 1 }
 0x24a   :  { %358 = vsyncpa [#allocation10], 1 }
 0x24b   :  { %359 = vsyncpa [#allocation13], 1 }
 0x24c   :  { %360 = vsyncpa [#allocation5], 1 }

</bundles_post_ra>
